<compile_context>
chip_gen: v7x
topology: tpu7x:2x2x1
jax: 0.10.0
libtpu: 0.0.40
codegen_flags: <defaults>
</compile_context>

<pallas_src>
import functools

import jax
import jax.numpy as jnp
from jax import lax
from jax.experimental import pallas as pl
from jax.experimental.pallas import tpu as pltpu

NEG = -1e30   # plain Python float: safe to close over inside Pallas kernels


# ----------------------------------------------------------------------------
# Hardware-aware tiling defaults
# ----------------------------------------------------------------------------
def _tpu_probe():
    kind = ""
    try:
        dev = jax.devices()[0]
        if dev.platform == "tpu":
            kind = dev.device_kind.lower()
    except Exception:
        pass
    vmem = None
    try:  # robust v7x (64 MiB/core) detection: ask the runtime directly
        vmem = int(pltpu.get_tpu_info().vmem_capacity_bytes)
    except Exception:
        vmem = None
    if vmem is None:  # fall back to device_kind heuristics
        vmem = (64 if ("v7" in kind or "7x" in kind) else 128) * 1024 * 1024
    return kind, vmem


_KIND, _VMEM_PHYS = _tpu_probe()
_IS_V5E = ("v5e" in _KIND) or ("v5 lite" in _KIND) or ("v5litepod" in _KIND)
_SMALL_VMEM = _VMEM_PHYS <= 96 * 1024 * 1024          # v7x: 64 MiB per core

# v5e MXU is 4x128x128 -> 128 tiles; v6e/v7x MXU is 2x256x256 -> 256 tiles.
_MN_PREF = (128,) if _IS_V5E else (256, 128)
# small-VMEM chips (v7x) get smaller K/hidden tiles and FFN row tiles.
_K_PREF = (256, 128) if _SMALL_VMEM else (512, 256, 128)
_FFN_M_PREF = (128,) if _SMALL_VMEM else _MN_PREF
# attention k-tile capped at 128: avoids v6e vreg spills on the per-head
# (tq,tk) f32 score tile and halves k/v residency on v7x at large D.
_ATTN_Q_PREF = _MN_PREF
_ATTN_K_PREF = (128,)
_VMEM_LIMIT = min((3 * _VMEM_PHYS) // 4, 64 * 1024 * 1024)


def _tile(dim, preferred):
    """Largest preferred tile dividing `dim`, else the full dim (legal block)."""
    for t in preferred:
        if dim % t == 0:
            return t
    return dim


def _row_tile(M, prefs):
    """Row-tile + padded row count: pick the preferred tile minimizing padding
    (rows are zero-padded upstream); small M falls back to a single block."""
    best = None
    for t in prefs:
        if M >= t:
            Mp = -(-M // t) * t
            if best is None or Mp < best[1]:
                best = (t, Mp)
    return best if best is not None else (M, M)


def _compiler_params(semantics):
    return pltpu.CompilerParams(dimension_semantics=semantics,
                                vmem_limit_bytes=_VMEM_LIMIT)


# ----------------------------------------------------------------------------
# Pallas kernels
# ----------------------------------------------------------------------------
def _matmul_kernel(x_ref, w_ref, o_ref, acc_ref):
    """Tiled y = x @ w with K-axis accumulation in an f32 VMEM scratch."""
    @pl.when(pl.program_id(2) == 0)
    def _():
        acc_ref[...] = jnp.zeros_like(acc_ref)

    acc_ref[...] += jnp.dot(x_ref[...], w_ref[...],
                            preferred_element_type=jnp.float32)

    @pl.when(pl.program_id(2) == pl.num_programs(2) - 1)
    def _():
        o_ref[...] = acc_ref[...].astype(o_ref.dtype)


def linear(x, w, *, out_dtype=jnp.bfloat16):
    """y = x @ w.  x: (..., K), w: (K, N) bf16; rows padded to a tile multiple."""
    lead = x.shape[:-1]
    K = x.shape[-1]
    N = w.shape[-1]
    x2 = x.reshape(-1, K).astype(jnp.bfloat16)
    M = x2.shape[0]
    tm, Mp = _row_tile(M, _MN_PREF)
    if Mp != M:
        x2 = jnp.pad(x2, ((0, Mp - M), (0, 0)))
    tn = _tile(N, _MN_PREF)
    tk = _tile(K, _K_PREF)
    cost = pl.CostEstimate(flops=2 * Mp * K * N, transcendentals=0,
                           bytes_accessed=2 * (Mp * K + K * N + Mp * N))
    out = pl.pallas_call(
        _matmul_kernel,
        out_shape=jax.ShapeDtypeStruct((Mp, N), out_dtype),
        grid=(Mp // tm, N // tn, K // tk),
        in_specs=[pl.BlockSpec((tm, tk), lambda i, j, k: (i, k)),
                  pl.BlockSpec((tk, tn), lambda i, j, k: (k, j))],
        out_specs=pl.BlockSpec((tm, tn), lambda i, j, k: (i, j)),
        scratch_shapes=[pltpu.VMEM((tm, tn), jnp.float32)],
        compiler_params=_compiler_params(("parallel", "parallel", "arbitrary")),
        cost_estimate=cost,
    )(x2, w)
    if Mp != M:
        out = out[:M]
    return out.reshape(lead + (N,))


def _rmsnorm_linear_kernel(x_ref, g_ref, w_ref, o_ref, xn_ref, *, eps):
    """Fused RMSNorm + matmul; norm computed once per row-tile (j==0) into a
    bf16 VMEM scratch and reused across all N-tiles."""
    @pl.when(pl.program_id(1) == 0)
    def _():
        x = x_ref[...].astype(jnp.float32)
        ms = jnp.mean(x * x, axis=-1, keepdims=True)
        xn_ref[...] = (x * lax.rsqrt(ms + eps)
                       * g_ref[...].astype(jnp.float32)).astype(jnp.bfloat16)

    o_ref[...] = jnp.dot(xn_ref[...], w_ref[...],
                         preferred_element_type=jnp.float32).astype(o_ref.dtype)


def rmsnorm_linear(x, g, w, *, out_dtype=jnp.bfloat16, eps=1e-6):
    """y = RMSNorm(x; g) @ w.  x: (..., K), g: (K,) f32, w: (K, N) bf16."""
    lead = x.shape[:-1]
    K = x.shape[-1]
    N = w.shape[-1]
    x2 = x.reshape(-1, K).astype(jnp.bfloat16)
    M = x2.shape[0]
    tm, Mp = _row_tile(M, _MN_PREF)
    if Mp != M:
        x2 = jnp.pad(x2, ((0, Mp - M), (0, 0)))
    tn = _tile(N, _MN_PREF)
    cost = pl.CostEstimate(flops=2 * Mp * K * N, transcendentals=Mp,
                           bytes_accessed=2 * (Mp * K + K * N + Mp * N))
    out = pl.pallas_call(
        functools.partial(_rmsnorm_linear_kernel, eps=eps),
        out_shape=jax.ShapeDtypeStruct((Mp, N), out_dtype),
        grid=(Mp // tm, N // tn),
        in_specs=[pl.BlockSpec((tm, K), lambda i, j: (i, 0)),
                  pl.BlockSpec((1, K), lambda i, j: (0, 0)),
                  pl.BlockSpec((K, tn), lambda i, j: (0, j))],
        out_specs=pl.BlockSpec((tm, tn), lambda i, j: (i, j)),
        scratch_shapes=[pltpu.VMEM((tm, K), jnp.bfloat16)],
        # j kept "arbitrary" so the normed-x scratch computed at j==0 is valid
        # for every N-tile of the same row-tile.
        compiler_params=_compiler_params(("parallel", "arbitrary")),
        cost_estimate=cost,
    )(x2, g.reshape(1, K).astype(jnp.float32), w)
    if Mp != M:
        out = out[:M]
    return out.reshape(lead + (N,))


def _ffn_kernel(x_ref, g_ref, w1_ref, w2_ref, o_ref, xn_ref, acc_ref,
                *, eps, use_norm):
    """Fused [RMSNorm] -> x@W1 -> SiLU -> @W2, tiled over the hidden dim.
    The norm is computed once per row-tile (hi==0) into a bf16 scratch."""
    hi = pl.program_id(1)

    @pl.when(hi == 0)
    def _():
        acc_ref[...] = jnp.zeros_like(acc_ref)
        x = x_ref[...].astype(jnp.float32)
        if use_norm:
            ms = jnp.mean(x * x, axis=-1, keepdims=True)
            x = x * lax.rsqrt(ms + eps) * g_ref[...].astype(jnp.float32)
        xn_ref[...] = x.astype(jnp.bfloat16)

    h = jnp.dot(xn_ref[...], w1_ref[...], preferred_element_type=jnp.float32)
    h = h * jax.nn.sigmoid(h)                      # SiLU
    acc_ref[...] += jnp.dot(h.astype(jnp.bfloat16), w2_ref[...],
                            preferred_element_type=jnp.float32)

    @pl.when(hi == pl.num_programs(1) - 1)
    def _():
        o_ref[...] = acc_ref[...].astype(o_ref.dtype)


def ffn_silu(x, g, w1, w2, *, use_norm, out_dtype=jnp.bfloat16, eps=1e-6):
    """[RMSNorm ->] Linear -> SiLU -> Linear (no bias)."""
    lead = x.shape[:-1]
    K = x.shape[-1]
    H = w1.shape[1]
    N = w2.shape[1]
    x2 = x.reshape(-1, K).astype(jnp.bfloat16)
    M = x2.shape[0]
    if g is None:
        g = jnp.ones((K,), jnp.float32)
    tm, Mp = _row_tile(M, _FFN_M_PREF)
    if Mp != M:
        x2 = jnp.pad(x2, ((0, Mp - M), (0, 0)))
    th = _tile(H, _K_PREF)
    cost = pl.CostEstimate(
        flops=2 * Mp * K * H + 2 * Mp * H * N,
        transcendentals=Mp * H,
        bytes_accessed=2 * (Mp * K + K * H + H * N + Mp * N))
    out = pl.pallas_call(
        functools.partial(_ffn_kernel, eps=eps, use_norm=use_norm),
        out_shape=jax.ShapeDtypeStruct((Mp, N), out_dtype),
        grid=(Mp // tm, H // th),
        in_specs=[pl.BlockSpec((tm, K), lambda mi, hi: (mi, 0)),
                  pl.BlockSpec((1, K), lambda mi, hi: (0, 0)),
                  pl.BlockSpec((K, th), lambda mi, hi: (0, hi)),
                  pl.BlockSpec((th, N), lambda mi, hi: (hi, 0))],
        out_specs=pl.BlockSpec((tm, N), lambda mi, hi: (mi, 0)),
        scratch_shapes=[pltpu.VMEM((tm, K), jnp.bfloat16),
                        pltpu.VMEM((tm, N), jnp.float32)],
        compiler_params=_compiler_params(("parallel", "arbitrary")),
        cost_estimate=cost,
    )(x2, g.reshape(1, K).astype(jnp.float32), w1, w2)
    if Mp != M:
        out = out[:M]
    return out.reshape(lead + (N,))


def _mha_kernel(bias_ref, cq_ref, sq_ref, ck_ref, sk_ref, q_ref, k_ref, v_ref,
                o_ref, m_ref, l_ref, acc_ref, *, heads, causal):
    """Flash-style attention, all heads of one batch row per grid step.

    q/k/v blocks are (1, T_tile, D) with heads packed along D.  RoPE is applied
    in-kernel (rotate-half on de-interleaved head columns == interleaved RoPE
    on the original layout).  Key-padding + causal bias are built in-kernel
    and pre-combined outside the head loop.  Online softmax across k-tiles;
    causal k-tiles fully above the diagonal are skipped; one lane-dense store.
    """
    qi = pl.program_id(1)
    ki = pl.program_id(2)
    nk = pl.num_programs(2)
    tq = q_ref.shape[1]
    tk = k_ref.shape[1]
    d = q_ref.shape[2]
    hd = d // heads
    hd2 = hd // 2

    @pl.when(ki == 0)
    def _():
        m_ref[...] = jnp.full_like(m_ref, NEG)
        l_ref[...] = jnp.zeros_like(l_ref)
        acc_ref[...] = jnp.zeros_like(acc_ref)

    def _rot_half(x):
        return jnp.concatenate([-x[:, hd2:], x[:, :hd2]], axis=-1)

    def _compute():
        q = q_ref[0]                                           # (tq, D) bf16
        k = k_ref[0]                                           # (tk, D) bf16
        v = v_ref[0]
        cq, sq = cq_ref[...], sq_ref[...]                      # (tq, hd) f32
        ck, sk = ck_ref[...], sk_ref[...]                      # (tk, hd) f32
        bias = bias_ref[0].astype(jnp.float32)                 # (1, tk)
        if causal:
            q_pos = qi * tq + lax.broadcasted_iota(jnp.int32, (tq, tk), 0)
            k_pos = ki * tk + lax.broadcasted_iota(jnp.int32, (tq, tk), 1)
            bias = bias + jnp.where(k_pos > q_pos, NEG, 0.0)   # (tq, tk)

        for h in range(heads):
            sl = slice(h * hd, (h + 1) * hd)
            qh = q[:, sl].astype(jnp.float32)
            qh = qh * cq + _rot_half(qh) * sq                  # RoPE (q)
            kh = k[:, sl].astype(jnp.float32)
            kh = kh * ck + _rot_half(kh) * sk                  # RoPE (k)
            # 1/sqrt(hd) is baked into the Q projection weights at init.
            s = lax.dot_general(qh.astype(jnp.bfloat16), kh.astype(jnp.bfloat16),
                                (((1,), (1,)), ((), ())),
                                preferred_element_type=jnp.float32)
            s = s + bias
            m_prev = m_ref[h]                                  # (tq, 1)
            m_new = jnp.maximum(m_prev, jnp.max(s, axis=-1, keepdims=True))
            alpha = jnp.exp(m_prev - m_new)
            p = jnp.exp(s - m_new)                             # (tq, tk)
            l_ref[h] = alpha * l_ref[h] + jnp.sum(p, axis=-1, keepdims=True)
            acc_ref[h] = alpha * acc_ref[h] + jnp.dot(
                p.astype(v.dtype), v[:, sl], preferred_element_type=jnp.float32)
            m_ref[h] = m_new

    if causal:
        # early-exit: skip k-tiles that lie entirely above the causal diagonal
        pl.when(ki * tk <= (qi + 1) * tq - 1)(_compute)
    else:
        _compute()

    @pl.when(ki == nk - 1)
    def _():
        outs = []
        for h in range(heads):
            inv = pl.reciprocal(l_ref[h], approx=True)         # (tq, 1)
            outs.append(acc_ref[h] * inv)
        # single full-width lane-dense store (no per-head masked stores)
        o_ref[0] = jnp.concatenate(outs, axis=-1).astype(o_ref.dtype)


def attention(q, k, v, pad_bias, rope_q, rope_k, heads, *, causal=False):
    """q,k,v: (B, T, D) bf16 (heads packed in D, de-interleaved per head);
    pad_bias: (B, 1, Tk) f32; rope_q/rope_k: (cos, sin), each (T, hd) f32."""
    B, Tq, D = q.shape
    Tk = k.shape[1]
    hd = D // heads
    # TODO(synk): Tq/Tk not divisible by the preferred tile fall back to a
    # single full block; pad+mask upstream for ragged long sequences.
    tq = _tile(Tq, _ATTN_Q_PREF)
    tk = _tile(Tk, _ATTN_K_PREF)
    cq, sq = rope_q
    ck, sk = rope_k
    kern = functools.partial(_mha_kernel, heads=heads, causal=causal)
    cost = pl.CostEstimate(
        flops=4 * B * Tq * Tk * D,
        transcendentals=B * heads * Tq * Tk,
        bytes_accessed=2 * B * D * (2 * Tq + 2 * Tk) + 4 * B * Tk)
    return pl.pallas_call(
        kern,
        out_shape=jax.ShapeDtypeStruct((B, Tq, D), q.dtype),
        grid=(B, Tq // tq, Tk // tk),
        in_specs=[pl.BlockSpec((1, 1, tk), lambda b, qi, ki: (b, 0, ki)),
                  pl.BlockSpec((tq, hd), lambda b, qi, ki: (qi, 0)),
                  pl.BlockSpec((tq, hd), lambda b, qi, ki: (qi, 0)),
                  pl.BlockSpec((tk, hd), lambda b, qi, ki: (ki, 0)),
                  pl.BlockSpec((tk, hd), lambda b, qi, ki: (ki, 0)),
                  pl.BlockSpec((1, tq, D), lambda b, qi, ki: (b, qi, 0)),
                  pl.BlockSpec((1, tk, D), lambda b, qi, ki: (b, ki, 0)),
                  pl.BlockSpec((1, tk, D), lambda b, qi, ki: (b, ki, 0))],
        out_specs=pl.BlockSpec((1, tq, D), lambda b, qi, ki: (b, qi, 0)),
        scratch_shapes=[pltpu.VMEM((heads, tq, 1), jnp.float32),   # running max
                        pltpu.VMEM((heads, tq, 1), jnp.float32),   # running sum
                        pltpu.VMEM((heads, tq, hd), jnp.float32)], # accumulator
        compiler_params=_compiler_params(("parallel", "parallel", "arbitrary")),
        cost_estimate=cost,
    )(pad_bias, cq, sq, ck, sk, q, k, v)


# ----------------------------------------------------------------------------
# RoPE / frames helpers (plain-JAX glue)
# ----------------------------------------------------------------------------
def precomputed_theta_pos_frequencies(head_dim, max_len, theta=10000.0):
    inv = theta ** (-jnp.arange(0, head_dim, 2, dtype=jnp.float32) / head_dim)
    pos = jnp.arange(max_len, dtype=jnp.float32)
    return pos[:, None] * inv[None, :]            # (max_len, head_dim // 2)


def _rope_tables(freq, length):
    """(length, hd) duplicated cos/sin tables for the in-kernel rotate-half."""
    f = freq[:length]
    cos = jnp.cos(f)
    sin = jnp.sin(f)
    return (jnp.concatenate([cos, cos], axis=-1).astype(jnp.float32),
            jnp.concatenate([sin, sin], axis=-1).astype(jnp.float32))


def create_frames(coords, common_token_mask):
    # TODO(synk): original `create_frames` source not provided; use the masked
    # centroid of the central atom + 4 canonical symmetry rotations.
    B = coords.shape[0]
    m = common_token_mask
    denom = jnp.maximum(m.sum(axis=1, keepdims=True), 1.0)           # (B,1)
    center_atom = coords[:, :, 1, :]                                 # (B,T,3)
    center = (center_atom * m[..., None]).sum(axis=1) / denom        # (B,3)
    center = center[:, None, :]                                      # (B,1,3)
    eye = jnp.eye(3, dtype=jnp.float32)
    rx = jnp.diag(jnp.array([1., -1., -1.], jnp.float32))
    ry = jnp.diag(jnp.array([-1., 1., -1.], jnp.float32))
    rz = jnp.diag(jnp.array([-1., -1., 1.], jnp.float32))
    frames = jnp.broadcast_to(jnp.stack([eye, rx, ry, rz])[None], (B, 4, 3, 3))
    return frames, center


def apply_frames(coords, common_token_mask, frames, center):
    # TODO(synk): original `apply_frames` source not provided; recenter + rotate
    # by each of the 4 frames, expanding batch by 4 (repeat_interleave order).
    B, T = coords.shape[:2]
    centered = coords - center[:, :, None, :]                        # (B,T,3,3)
    rot = jnp.einsum('bfij,btaj->bftai', frames, centered)           # (B,4,T,3,3)
    return rot.reshape(B * 4, T, 3, 3)


def _pad_bias(padding_mask):
    """(B, Tk) float mask (nonzero => padded key) -> (B, 1, Tk) additive bias."""
    return jnp.where(padding_mask > 0.5, NEG, 0.0).astype(jnp.float32)[:, None, :]


# ----------------------------------------------------------------------------
# Model blocks
# ----------------------------------------------------------------------------
def encoder_block(p, x, rope, pad_bias, heads):
    D = x.shape[-1]
    qkv = rmsnorm_linear(x, p['pre_attn_norm'], p['attn']['wqkv'])
    q, k, v = qkv[..., :D], qkv[..., D:2 * D], qkv[..., 2 * D:]
    attn = attention(q, k, v, pad_bias, rope, rope, heads, causal=False)
    h = x + linear(attn, p['attn']['wo'])
    ffn = ffn_silu(h, p['pre_ffw_norm'], p['ffw']['w1'], p['ffw']['w2'],
                   use_norm=True)
    return h + ffn


def decoder_block(p, d_x, e_x, rope_d, rope_e, d_pad_bias, e_pad_bias, heads):
    D = d_x.shape[-1]
    # causal self-attention
    qkv = rmsnorm_linear(d_x, p['pre_self_attn_norm'], p['self_attn']['wqkv'])
    q, k, v = qkv[..., :D], qkv[..., D:2 * D], qkv[..., 2 * D:]
    sa = attention(q, k, v, d_pad_bias, rope_d, rope_d, heads, causal=True)
    h = d_x + linear(sa, p['self_attn']['wo'])
    # cross-attention (query normed; keys/values straight from encoder output)
    q = rmsnorm_linear(h, p['pre_cross_attn_norm'], p['cross_attn']['wq'])
    kv = linear(e_x, p['cross_attn']['wkv'])
    k, v = kv[..., :D], kv[..., D:]
    ca = attention(q, k, v, e_pad_bias, rope_d, rope_e, heads, causal=False)
    z = h + linear(ca, p['cross_attn']['wo'])
    ffn = ffn_silu(z, p['pre_ffw_norm'], p['ffw']['w1'], p['ffw']['w2'],
                   use_norm=True)
    return z + ffn


def encode(params, enc_in, heads):
    frames, center = create_frames(enc_in['coords'], enc_in['common_token_mask'])
    coords_f = apply_frames(enc_in['coords'], enc_in['common_token_mask'],
                            frames, center)                           # (4B,S,3,3)
    seq = jnp.repeat(enc_in['sequence'], 4, axis=0)
    pad = jnp.repeat(enc_in['padding_mask'], 4, axis=0)
    coords9 = coords_f.reshape(coords_f.shape[0], coords_f.shape[1], 9)
    # embedding gather + K=9 projection left to XLA (negligible MXU work).
    e_x = (params['seq_emb'][seq]
           + jnp.einsum('btk,kd->btd', coords9, params['coords_w']))
    e_x = e_x.astype(jnp.bfloat16)
    rope_e = _rope_tables(params['freq'], e_x.shape[1])
    pad_bias = _pad_bias(pad)
    for lyr in params['encoder']:
        e_x = encoder_block(lyr, e_x, rope_e, pad_bias, heads)
    return dict(encoder_embedding=e_x, encoder_padding_mask=pad,
                frames=frames, center=center)


def decode(params, dec_in, enc_out, heads):
    frames, center = enc_out['frames'], enc_out['center']
    coords_f = apply_frames(dec_in['coords'], dec_in['common_token_mask'],
                            frames, center)                           # (4B,T,3,3)
    seq = jnp.repeat(dec_in['sequence'], 4, axis=0)
    pad = jnp.repeat(dec_in['padding_mask'], 4, axis=0)
    coords9 = coords_f.reshape(coords_f.shape[0], coords_f.shape[1], 9)
    d_x = (params['seq_emb'][seq]
           + jnp.einsum('btk,kd->btd', coords9, params['coords_w']))
    d_x = d_x.astype(jnp.bfloat16)
    rope_d = _rope_tables(params['freq'], d_x.shape[1])
    rope_e = _rope_tables(params['freq'], enc_out['encoder_embedding'].shape[1])
    d_pad_bias = _pad_bias(pad)
    e_pad_bias = _pad_bias(enc_out['encoder_padding_mask'])
    for lyr in params['decoder']:
        d_x = decoder_block(lyr, d_x, enc_out['encoder_embedding'], rope_d,
                            rope_e, d_pad_bias, e_pad_bias, heads)
    logits = ffn_silu(d_x, None, params['seq_pred']['w1'],
                      params['seq_pred']['w2'], use_norm=False,
                      out_dtype=jnp.float32)
    # coords head: first (dim x dim) matmul on the MXU; SiLU + the tiny
    # (dim -> 9) projection in XLA (N=9 is ~3.5% MXU lane utilization).
    ch = linear(d_x, params['coords_pred']['w1']).astype(jnp.float32)
    ch = ch * jax.nn.sigmoid(ch)
    coords_in_frame = jnp.einsum(
        'btd,dk->btk', ch, params['coords_pred']['w2'].astype(jnp.float32))
    return dict(logits=logits, coords_in_frame=coords_in_frame,
                common_token_mask=dec_in['common_token_mask'],
                frames=frames, center=center)


def t5_3d_forward(params, enc_in, dec_in, heads):
    enc_out = encode(params, enc_in, heads)
    return decode(params, dec_in, enc_out, heads)


# ----------------------------------------------------------------------------
# Deterministic parameter initialization (matmul weights stored bf16)
# ----------------------------------------------------------------------------
def init_params(key, vocab_size, dim, heads, n_layers, max_len=1000):
    keys = iter(jax.random.split(key, 256))
    hd = dim // heads
    q_scale = float(hd) ** -0.5

    def w(shape, scale=0.02, dtype=jnp.bfloat16):
        return (jax.random.normal(next(keys), shape, jnp.float32) * scale).astype(dtype)

    def _deinterleave(wm):
        # Permute each head's output columns from interleaved (even, odd) RoPE
        # pairs to (first-half, second-half): together with the in-kernel
        # rotate-half rotation this is exactly equivalent to interleaved RoPE
        # on the unpermuted projection (pure column permutation, free).
        D = wm.shape[1]
        idx = jnp.arange(D).reshape(heads, hd // 2, 2).transpose(0, 2, 1).reshape(D)
        return wm[:, idx]

    def self_attn_p():
        # fused Wq|Wk|Wv -> one (D, 3D) matmul; softmax scale baked into Wq
        wq = (_deinterleave(w((dim, dim))) * q_scale).astype(jnp.bfloat16)
        wk = _deinterleave(w((dim, dim)))
        wv = w((dim, dim))
        return dict(wqkv=jnp.concatenate([wq, wk, wv], axis=-1), wo=w((dim, dim)))

    def cross_attn_p():
        wq = (_deinterleave(w((dim, dim))) * q_scale).astype(jnp.bfloat16)
        wk = _deinterleave(w((dim, dim)))
        wv = w((dim, dim))
        return dict(wq=wq, wkv=jnp.concatenate([wk, wv], axis=-1),
                    wo=w((dim, dim)))

    def ffw_p():
        # TODO(synk): FeedForward definition not provided; Linear->SiLU->Linear(4x).
        return dict(w1=w((dim, 4 * dim)), w2=w((4 * dim, dim)))

    enc_layers = [dict(pre_attn_norm=jnp.ones((dim,), jnp.float32),
                       attn=self_attn_p(),
                       pre_ffw_norm=jnp.ones((dim,), jnp.float32),
                       ffw=ffw_p()) for _ in range(n_layers)]
    dec_layers = [dict(pre_self_attn_norm=jnp.ones((dim,), jnp.float32),
                       self_attn=self_attn_p(),
                       pre_cross_attn_norm=jnp.ones((dim,), jnp.float32),
                       cross_attn=cross_attn_p(),
                       pre_ffw_norm=jnp.ones((dim,), jnp.float32),
                       ffw=ffw_p()) for _ in range(n_layers // 2)]
    return dict(
        seq_emb=w((vocab_size, dim), 1.0, jnp.float32),
        coords_w=w((9, dim), 0.02, jnp.float32),
        encoder=enc_layers,
        decoder=dec_layers,
        seq_pred=dict(w1=w((dim, dim)), w2=w((dim, vocab_size))),
        coords_pred=dict(w1=w((dim, dim)), w2=w((dim, 9))),
        freq=precomputed_theta_pos_frequencies(dim // heads, max_len),
    )


# ----------------------------------------------------------------------------
if __name__ == "__main__":
    vocab_size, hidden_dim, num_heads, n_layers = 32, 32, 4, 4
    B, S, T = 2, 8, 8

    key = jax.random.PRNGKey(0)
    kp, kd = jax.random.split(key)
    params = init_params(kp, vocab_size, hidden_dim, num_heads, n_layers)

    ks = jax.random.split(kd, 4)
    enc_pad = jnp.zeros((B, S), jnp.float32).at[1, -1].set(1.0)  # one padded key
    encoder_input = dict(
        sequence=jax.random.randint(ks[0], (B, S), 0, vocab_size, jnp.int32),
        coords=jax.random.normal(ks[1], (B, S, 3, 3), jnp.float32),
        padding_mask=enc_pad,
        common_token_mask=jnp.ones((B, S), jnp.float32),
    )
    decoder_input = dict(
        sequence=jax.random.randint(ks[2], (B, T), 0, vocab_size, jnp.int32),
        coords=jax.random.normal(ks[3], (B, T, 3, 3), jnp.float32),
        padding_mask=jnp.zeros((B, T), jnp.float32),
        common_token_mask=jnp.ones((B, T), jnp.float32),
    )

    out = t5_3d_forward(params, encoder_input, decoder_input, num_heads)
    out = jax.block_until_ready(out)

    assert out['logits'].shape == (4 * B, T, vocab_size)
    assert out['coords_in_frame'].shape == (4 * B, T, 9)
    assert out['common_token_mask'].shape == (B, T)
    assert out['frames'].shape == (B, 4, 3, 3)
    assert out['center'].shape == (B, 1, 3)
    assert bool(jnp.all(jnp.isfinite(out['logits'])))
    assert bool(jnp.all(jnp.isfinite(out['coords_in_frame'])))
    print("KERNEL_OK")
</pallas_src>

<mosaic_0001>
module attributes {stable_mosaic.version = 11 : i64} {
  func.func @_rmsnorm_linear_kernel(%arg0: i32, %arg1: i32, %arg2: memref<64x32xbf16, #tpu.memory_space<vmem>>, %arg3: memref<1x32xf32, #tpu.memory_space<vmem>>, %arg4: memref<32x96xbf16, #tpu.memory_space<vmem>>, %arg5: memref<64x96xbf16, #tpu.memory_space<vmem>>, %arg6: memref<64x32xbf16, #tpu.memory_space<vmem>>) attributes {dimension_semantics = [#tpu.dimension_semantics<parallel>, #tpu.dimension_semantics<arbitrary>], iteration_bounds = array<i64: 1, 1>, scalar_prefetch = 0 : i64, scratch_operands = 1 : i64, tpu.core_type = #tpu.core_type<tc>, window_params = [{transform_indices = @transform_0, window_bounds = array<i64: 64, 32>}, {pipeline_mode = #tpu.pipeline_mode<synchronous>, transform_indices = @transform_1, window_bounds = array<i64: 1, 32>}, {transform_indices = @transform_2, window_bounds = array<i64: 32, 96>}, {transform_indices = @transform_3, window_bounds = array<i64: 64, 96>}]} {
    %c0_i32 = arith.constant 0 : i32
    %0 = arith.cmpi eq, %arg1, %c0_i32 : i32
    %1 = arith.extui %0 : i1 to i32
    %c0_i32_0 = arith.constant 0 : i32
    %2 = arith.cmpi ne, %1, %c0_i32_0 : i32
    scf.if %2 {
      %c0_6 = arith.constant 0 : index
      %c0_7 = arith.constant 0 : index
      %8 = vector.load %arg2[%c0_6, %c0_7] : memref<64x32xbf16, #tpu.memory_space<vmem>>, vector<64x32xbf16>
      %9 = arith.extf %8 : vector<64x32xbf16> to vector<64x32xf32>
      %10 = arith.mulf %9, %9 : vector<64x32xf32>
      %cst_8 = arith.constant dense<0.000000e+00> : vector<64xf32>
      %11 = vector.multi_reduction <add>, %10, %cst_8 [1] : vector<64x32xf32> to vector<64xf32>
      %12 = vector.shape_cast %11 : vector<64xf32> to vector<64x1xf32>
      %cst_9 = arith.constant 3.200000e+01 : f32
      %13 = vector.broadcast %cst_9 : f32 to vector<64x1xf32>
      %14 = arith.divf %12, %13 : vector<64x1xf32>
      %cst_10 = arith.constant 9.99999997E-7 : f32
      %15 = vector.broadcast %cst_10 : f32 to vector<64x1xf32>
      %16 = arith.addf %14, %15 : vector<64x1xf32>
      %17 = math.rsqrt %16 : vector<64x1xf32>
      %18 = vector.broadcast %17 : vector<64x1xf32> to vector<64x32xf32>
      %19 = arith.mulf %9, %18 : vector<64x32xf32>
      %c0_11 = arith.constant 0 : index
      %c0_12 = arith.constant 0 : index
      %20 = vector.load %arg3[%c0_11, %c0_12] : memref<1x32xf32, #tpu.memory_space<vmem>>, vector<1x32xf32>
      %21 = vector.broadcast %20 : vector<1x32xf32> to vector<64x32xf32>
      %22 = arith.mulf %19, %21 : vector<64x32xf32>
      %23 = arith.truncf %22 : vector<64x32xf32> to vector<64x32xbf16>
      %c0_13 = arith.constant 0 : index
      %c0_14 = arith.constant 0 : index
      %24 = vector.load %arg6[%c0_13, %c0_14] : memref<64x32xbf16, #tpu.memory_space<vmem>>, vector<64x32xbf16>
      tpu.vector_store %arg6[%c0_13, %c0_14], %23 {strides = array<i32>} : memref<64x32xbf16, #tpu.memory_space<vmem>>, vector<64x32xbf16>,
    } else {
    }
    %c0 = arith.constant 0 : index
    %c0_1 = arith.constant 0 : index
    %3 = vector.load %arg6[%c0, %c0_1] : memref<64x32xbf16, #tpu.memory_space<vmem>>, vector<64x32xbf16>
    %c0_2 = arith.constant 0 : index
    %c0_3 = arith.constant 0 : index
    %4 = vector.load %arg4[%c0_2, %c0_3] : memref<32x96xbf16, #tpu.memory_space<vmem>>, vector<32x96xbf16>
    %cst = arith.constant dense<0.000000e+00> : vector<64x96xf32>
    %5 = tpu.matmul %3, %4, %cst {dimension_numbers = #tpu.dot_dimension_numbers<[1], [0], [0], [1], [0, 0, 1, 1], [], []>} : vector<64x32xbf16>, vector<32x96xbf16>, vector<64x96xf32> -> vector<64x96xf32>
    %6 = arith.truncf %5 : vector<64x96xf32> to vector<64x96xbf16>
    %c0_4 = arith.constant 0 : index
    %c0_5 = arith.constant 0 : index
    %7 = vector.load %arg5[%c0_4, %c0_5] : memref<64x96xbf16, #tpu.memory_space<vmem>>, vector<64x96xbf16>
    tpu.vector_store %arg5[%c0_4, %c0_5], %6 {strides = array<i32>} : memref<64x96xbf16, #tpu.memory_space<vmem>>, vector<64x96xbf16>,
    return
  }
  func.func @transform_0(%arg0: i32, %arg1: i32) -> (i32, i32) {
    %c0_i32 = arith.constant 0 : i32
    %c0_i32_0 = arith.constant 0 : i32
    return %arg0, %c0_i32 : i32, i32
  }
  func.func @transform_1(%arg0: i32, %arg1: i32) -> (i32, i32) {
    %c0_i32 = arith.constant 0 : i32
    %c0_i32_0 = arith.constant 0 : i32
    %c0_i32_1 = arith.constant 0 : i32
    return %c0_i32, %c0_i32_0 : i32, i32
  }
  func.func @transform_2(%arg0: i32, %arg1: i32) -> (i32, i32) {
    %c0_i32 = arith.constant 0 : i32
    %c0_i32_0 = arith.constant 0 : i32
    return %c0_i32, %arg1 : i32, i32
  }
  func.func @transform_3(%arg0: i32, %arg1: i32) -> (i32, i32) {
    %c0_i32 = arith.constant 0 : i32
    return %arg0, %arg1 : i32, i32
  }
}

</mosaic_0001>

<bundles_post_ra>
// kernel: tpu_custom_call.1
= control target key start
LH: loop header
LB: loop body
LE: loop exit
PB: predicated region body
PF: predicated region fallthrough
CT: control target
= control target key end

     0   :  { %8 = vsyncpa [#allocation4], 0  ;;  %s657_s0 = inlined_call_operand.hbm [shape: bf16[64,32], index: 0, kind: input, shape index: {}]   ;;  %s658_s1 = inlined_call_operand.hbm [shape: f32[1,32], index: 1, kind: input, shape index: {}]   ;;  %s659_s2 = inlined_call_operand.hbm [shape: bf16[32,96], index: 2, kind: input, shape index: {}]   ;;  %s660_s3 = inlined_call_operand.hbm [shape: bf16[64,96], index: 3, kind: output, shape index: {}]  }
   0x1   :  { %9 = vsyncpa [#allocation7], 0 }
   0x2   :  { %10 = vsyncpa [#allocation5], 0  ;;  %s503_s12 = smov [#allocation6]   ;;  %s504_s14 = smov [#allocation3]  }
   0x3   :  { %s29_s13 = sshll.u32 %s503_s12, 4  ;;  %s16_s15 = sshll.u32 %s504_s14, 4  ;;  %s30_s13 = int_to_ptr.vmem [resolvable:$true] %s29_s13  ;;  %s529_s15 = int_to_ptr.vmem [resolvable:$true] %s16_s15 }
   0x4   :  { %s409_s18 = scalar_lea.hbm %s658_s1, 16 }
   0x5   :  { %p410_p0 = scmp.ne.s32.totalorder %s658_s1, %s409_s18  ;;  %p413_p1 = scmp.lt.u32.totalorder %s409_s18, %s658_s1 }
   0x7   :  { %p415_p2 = pnand %p413_p1, %p410_p0 }
   0x9   :  { %418 = shalt.err (!%p415_p2)
}
   0xa   :  { %s419_s23 = scalar_lea.vmem %s30_s13, 16  ;;  %s423_s24 = scalar_lea.vmem %s30_s13, 32 }
   0xb   :  { %p420_p3 = scmp.ne.s32.totalorder %s30_s13, %s419_s23  ;;  %p424_p4 = scmp.lt.s32.totalorder %s30_s13, %s30_s13 }
   0xc   :  { %p425_p5 = scmp.lt.s32.totalorder %s423_s24, %s419_s23 }
   0xe   :  { %p426_p6 = por %p425_p5, %p424_p4 }
  0x10   :  { %p427_p7 = pnand %p426_p6, %p420_p3 }
  0x12   :  { %430 = shalt.err (!%p427_p7)
}
  0x13   :  { %32 = dma.hbm_to_vmem [thread:$0]  %s658_s1, 16, %s30_s13, [#allocation7]  }
  0x14   :  { %s431_s29 = scalar_lea.hbm %s657_s0, 512 }
  0x15   :  { %p432_p8 = scmp.ne.s32.totalorder %s657_s0, %s431_s29  ;;  %p435_p9 = scmp.lt.u32.totalorder %s431_s29, %s657_s0 }
  0x17   :  { %p437_p10 = pnand %p435_p9, %p432_p8 }
  0x19   :  { %440 = shalt.err (!%p437_p10)
}
  0x1a   :  { %s441_s7 = scalar_lea.vmem %s529_s15, 512  ;;  %p446_p12 = scmp.lt.s32.totalorder %s529_s15, %s529_s15 }
  0x1b   :  { %p442_p11 = scmp.ne.s32.totalorder %s529_s15, %s441_s7  ;;  %p447_p13 = scmp.lt.s32.totalorder %s441_s7, %s441_s7 }
  0x1d   :  { %p448_p0 = por %p447_p13, %p446_p12 }
  0x1f   :  { %p449_p1 = pnand %p448_p0, %p442_p11 }
  0x21   :  { %452 = shalt.err (!%p449_p1)
}
  0x22   :  { %s505_s1 = smov 64   ;;  %s506_s8 = smov 4  }
  0x23   :  { %22 = dma.hbm_to_vmem [thread:$0]  %s657_s0, 512, %s529_s15, [#allocation4], %s505_s1, %s505_s1, %s506_s8  }
  0x24   :  { %s507_s11 = smov [#allocation8]   ;;  %s453_s16 = scalar_lea.hbm %s659_s2, 256 }
  0x25   :  { %s38_s12 = sshll.u32 %s507_s11, 4  ;;  %p454_p2 = scmp.ne.s32.totalorder %s659_s2, %s453_s16  ;;  %s39_s12 = int_to_ptr.vmem [resolvable:$true] %s38_s12 }
  0x26   :  { %p457_p3 = scmp.lt.u32.totalorder %s453_s16, %s659_s2 }
  0x28   :  { %p459_p4 = pnand %p457_p3, %p454_p2 }
  0x2a   :  { %462 = shalt.err (!%p459_p4)
}
  0x2b   :  { %s463_s21 = scalar_lea.vmem %s39_s12, 256  ;;  %p468_p6 = scmp.lt.s32.totalorder %s39_s12, %s39_s12 }
  0x2c   :  { %p464_p5 = scmp.ne.s32.totalorder %s39_s12, %s463_s21  ;;  %p469_p7 = scmp.lt.s32.totalorder %s463_s21, %s463_s21 }
  0x2e   :  { %p470_p8 = por %p469_p7, %p468_p6 }
  0x30   :  { %p471_p9 = pnand %p470_p8, %p464_p5 }
  0x32   :  { %474 = shalt.err (!%p471_p9)
}
  0x33   :  { %44 = dma.hbm_to_vmem [thread:$0]  %s659_s2, 256, %s39_s12, [#allocation7], %s505_s1, %s505_s1, %s506_s8  }
  0x34   :  { %497 = dma.done.wait [#allocation4], 512  }
  0x35   :  { %498 = vsyncadd [#allocation4], 4294966784 }
  0x36   :  { %499 = dma.done.wait [#allocation7], 272  }
  0x37   :  { %500 = vsyncadd [#allocation7], 4294967024  ;;  %v361_v0 = vld [vmem:[#allocation3 + $0x10] sm:$0xff]   ;;  %vm83_vm0 = vcmask 261120   ;;  %v345_v1 = vld [vmem:[#allocation3] sm:$0xff]   ;;  %vm294_vm1 = vcmask 781312  }
  0x38   :  { %v360_v2 = vld [vmem:[#allocation3 + $0x8] sm:$0xff]   ;;  %v578_v3 = vunpack.c.l.bf16 %v361_v0  ;;  %v580_v4 = vunpack.c.l.bf16 %v345_v1  ;;  %v582_v5 = vunpack.c.h.bf16 %v361_v0  ;;  %v584_v6 = vunpack.c.h.bf16 %v345_v1  ;;  %v362_v13 = vld [vmem:[#allocation3 + $0x18] sm:$0xff]   ;;  %v321_v58 = vld [vmem:[#allocation6] ss:$0 sm:$0xff]  ;;  %s508_s2 = smov [#allocation9]  }
  0x39   :  { %v586_v7 = vunpack.c.h.bf16 %v360_v2  ;;  %v588_v8 = vunpack.c.l.bf16 %v360_v2  ;;  %v600_v16 = vunpack.c.h.bf16 %v362_v13  ;;  %v602_v17 = vunpack.c.l.bf16 %v362_v13  ;;  %v391_v28 = vld [vmem:[#allocation8] sm:$0xff]   ;;  %v392_v29 = vld [vmem:[#allocation8 + $0x8] sm:$0xff]   ;;  %s308_s22 = sshll.u32 %s508_s2, 4  ;;  %s309_s22 = int_to_ptr.vmem [resolvable:$true] %s308_s22 }
  0x3a   :  { %v79_v9 = vmul.f32 %v578_v3, %v578_v3  ;;  %v75_v10 = vmul.f32 %v580_v4, %v580_v4  ;;  %v80_v11 = vmul.f32 %v582_v5, %v582_v5  ;;  %v76_v12 = vmul.f32 %v584_v6, %v584_v6  ;;  %369 = vmatprep.subr.bf16.mxu0 %v391_v28  ;;  %s475_s23 = scalar_lea.vmem %s309_s22, 512  ;;  %p480_p11 = scmp.lt.s32.totalorder %s309_s22, %s309_s22 }
  0x3b   :  { %v78_v20 = vmul.f32 %v586_v7, %v586_v7  ;;  %v77_v21 = vmul.f32 %v588_v8, %v588_v8  ;;  %v82_v24 = vmul.f32 %v600_v16, %v600_v16  ;;  %v81_v25 = vmul.f32 %v602_v17, %v602_v17  ;;  %381 = vmatprep.subr.bf16.mxu1 %v391_v28  ;;  %p476_p10 = scmp.ne.s32.totalorder %s309_s22, %s475_s23  ;;  %p481_p12 = scmp.lt.s32.totalorder %s475_s23, %s475_s23 }
  0x3c   :  { %v96_v14 = vsel %vm83_vm0, %v79_v9, 0.0  ;;  %v84_v15 = vsel %vm83_vm0, %v75_v10, 0.0  ;;  %v99_v18 = vsel %vm83_vm0, %v80_v11, 0.0  ;;  %v87_v19 = vsel %vm83_vm0, %v76_v12, 0.0  ;;  %370 = vmatpush3.bf16.msra.mxu0 %v391_v28  ;;  %383 = vmatpush3.bf16.msra.mxu1 %v391_v28 }
  0x3d   :  { %97 = vadd.xlane.f32.xlu1 %v96_v14  ;;  %85 = vadd.xlane.f32.xlu0 %v84_v15  ;;  %v93_v22 = vsel %vm83_vm0, %v78_v20, 0.0  ;;  %v90_v23 = vsel %vm83_vm0, %v77_v21, 0.0  ;;  %v105_v26 = vsel %vm83_vm0, %v82_v24, 0.0  ;;  %v102_v27 = vsel %vm83_vm0, %v81_v25, 0.0  ;;  %p482_p13 = por %p481_p12, %p480_p11 }
  0x3e   :  { %371 = vmatprep.subr.bf16.mxu0 %v392_v29  ;;  %382 = vmatprep.subr.bf16.mxu1 %v392_v29 }
  0x3f   :  { %p483_p0 = pnand %p482_p13, %p476_p10 }
  0x40   :  { %372 = vmatpush3.bf16.msra.mxu0 %v392_v29  ;;  %384 = vmatpush3.bf16.msra.mxu1 %v392_v29 }
  0x41   :  { %100 = vadd.xlane.f32.xlu1 %v99_v18  ;;  %88 = vadd.xlane.f32.xlu0 %v87_v19 }
  0x45   :  { %94 = vadd.xlane.f32.xlu1 %v93_v22  ;;  %91 = vadd.xlane.f32.xlu0 %v90_v23 }
  0x49   :  { %106 = vadd.xlane.f32.xlu1 %v105_v26  ;;  %103 = vadd.xlane.f32.xlu0 %v102_v27 }
  0xca   :  { %v98_v30 = vpop.xlane.xlu1 %97  ;;  %v86_v31 = vpop.xlane.xlu0 %85 }
  0xcb   :  { %v113_v32 = vmul.f32 0.03125, %v98_v30  ;;  %v109_v33 = vmul.f32 0.03125, %v86_v31 }
  0xcd   :  { %v121_v34 = vadd.f32 1e-06, %v113_v32  ;;  %v117_v35 = vadd.f32 1e-06, %v109_v33 }
  0xce   :  { %v101_v36 = vpop.xlane.xlu1 %100  ;;  %v89_v37 = vpop.xlane.xlu0 %88 }
  0xcf   :  { %393 = vrsqrt.f32 %v121_v34  ;;  %v114_v38 = vmul.f32 0.03125, %v101_v36  ;;  %v110_v39 = vmul.f32 0.03125, %v89_v37 }
  0xd0   :  { %395 = vrsqrt.f32 %v117_v35 }
  0xd1   :  { %v122_v40 = vadd.f32 1e-06, %v114_v38  ;;  %v118_v41 = vadd.f32 1e-06, %v110_v39 }
  0xd2   :  { %v95_v42 = vpop.xlane.xlu1 %94  ;;  %v92_v43 = vpop.xlane.xlu0 %91 }
  0xd3   :  { %397 = vrsqrt.f32 %v122_v40  ;;  %v112_v44 = vmul.f32 0.03125, %v95_v42  ;;  %v111_v45 = vmul.f32 0.03125, %v92_v43 }
  0xd4   :  { %399 = vrsqrt.f32 %v118_v41 }
  0xd5   :  { %v120_v46 = vadd.f32 1e-06, %v112_v44  ;;  %v119_v47 = vadd.f32 1e-06, %v111_v45 }
  0xd6   :  { %v107_v48 = vpop.xlane.xlu1 %106  ;;  %v104_v49 = vpop.xlane.xlu0 %103 }
  0xd7   :  { %401 = vrsqrt.f32 %v120_v46  ;;  %v116_v50 = vmul.f32 0.03125, %v107_v48  ;;  %v115_v51 = vmul.f32 0.03125, %v104_v49 }
  0xd8   :  { %403 = vrsqrt.f32 %v119_v47 }
  0xd9   :  { %v394_v52 = vpop.eup %393  ;;  %v124_v53 = vadd.f32 1e-06, %v116_v50  ;;  %v123_v54 = vadd.f32 1e-06, %v115_v51 }
  0xda   :  { %v396_v55 = vpop.eup %395  ;;  %v137_v56 = vmul.f32 %v394_v52, %v578_v3 }
  0xdb   :  { %405 = vrsqrt.f32 %v124_v53  ;;  %v133_v59 = vmul.f32 %v396_v55, %v580_v4 }
  0xdc   :  { %407 = vrsqrt.f32 %v123_v54  ;;  %v152_v63 = vmul.f32 %v321_v58, %v137_v56 }
  0xdd   :  { %v398_v57 = vpop.eup %397  ;;  %v148_v2 = vmul.f32 %v321_v58, %v133_v59 }
  0xde   :  { %v400_v60 = vpop.eup %399  ;;  %v138_v61 = vmul.f32 %v398_v57, %v582_v5 }
  0xdf   :  { %v134_v62 = vmul.f32 %v400_v60, %v584_v6 }
  0xe0   :  { %v153_v0 = vmul.f32 %v321_v58, %v138_v61 }
  0xe1   :  { %v402_v1 = vpop.eup %401  ;;  %v149_v9 = vmul.f32 %v321_v58, %v134_v62 }
  0xe2   :  { %v404_v10 = vpop.eup %403  ;;  %v158_v11 = vpack.c.bf16 %v153_v0, %v152_v63  ;;  %v136_v12 = vmul.f32 %v402_v1, %v586_v7 }
  0xe3   :  { %v156_v3 = vpack.c.bf16 %v149_v9, %v148_v2  ;;  %v135_v13 = vmul.f32 %v404_v10, %v588_v8 }
  0xe4   :  { %162 = vst.msk [vmem:[#allocation2 + $0x10] sm:$0xff] %vm83_vm0, %v158_v11  ;;  %v151_v4 = vmul.f32 %v321_v58, %v136_v12 }
  0xe5   :  { %v406_v14 = vpop.eup %405  ;;  %160 = vst.msk [vmem:[#allocation2] sm:$0xff] %vm83_vm0, %v156_v3  ;;  %v150_v5 = vmul.f32 %v321_v58, %v135_v13 }
  0xe6   :  { %v408_v6 = vpop.eup %407  ;;  %v140_v15 = vmul.f32 %v406_v14, %v600_v16 }
  0xe7   :  { %v157_v18 = vpack.c.bf16 %v151_v4, %v150_v5  ;;  %v139_v19 = vmul.f32 %v408_v6, %v602_v17 }
  0xe8   :  { %v155_v20 = vmul.f32 %v321_v58, %v140_v15 }
  0xe9   :  { %161 = vst.msk [vmem:[#allocation2 + $0x8] sm:$0xff] %vm83_vm0, %v157_v18  ;;  %v154_v7 = vmul.f32 %v321_v58, %v139_v19 }
  0xeb   :  { %v159_v21 = vpack.c.bf16 %v155_v20, %v154_v7  ;;  %v166_v22 = vld [vmem:[#allocation2 + $0x10] sm:$0xff] }
  0xec   :  { %v164_v8 = vld [vmem:[#allocation2] sm:$0xff]  ;;  %377 = vmatprep.mubr.msk.bf16.mxu1 %vm83_vm0, %v166_v22 }
  0xed   :  { %163 = vst.msk [vmem:[#allocation2 + $0x18] sm:$0xff] %vm83_vm0, %v159_v21  ;;  %373 = vmatprep.mubr.msk.bf16.mxu0 %vm83_vm0, %v164_v8 }
  0xf0   :  { %v165_v23 = vld [vmem:[#allocation2 + $0x8] sm:$0xff] }
  0xf1   :  { %374 = vmatmul.mubr.msk.bf16.vlgmr.msra.gmra.mrb[0].mxu0 %vm83_vm0, %v165_v23 }
  0xf4   :  { %v167_v16 = vld [vmem:[#allocation2 + $0x18] sm:$0xff] }
  0xf5   :  { %378 = vmatmul.mubr.msk.bf16.vlgmr.msra.gmra.mrb[0].mxu1 %vm83_vm0, %v167_v16 }
 0x1c4   :  { %v375_v17 = vpop.f32.mrb[0].mxu0 }
 0x1c5   :  { %v338_v24 = vpack.c.bf16 %v375_v17, %v375_v17  ;;  %v231_v25 = vpop.f32.mrb[1].mxu0 }
 0x1c6   :  { %v336_v26 = vpack.c.bf16 %v231_v25, %v231_v25  ;;  %v376_v27 = vpop.f32.mrb[2].mxu0 }
 0x1c7   :  { %297 = vst.msk [vmem:[#allocation9 + $0x8] sm:$0xf] %vm294_vm1, %v338_v24  ;;  %v339_v28 = vpack.c.bf16 %v376_v27, %v376_v27  ;;  %v234_v29 = vpop.f32.mrb[3].mxu0 }
 0x1c8   :  { %295 = vst.msk [vmem:[#allocation9] sm:$0xf] %vm294_vm1, %v336_v26  ;;  %v337_v30 = vpack.c.bf16 %v234_v29, %v234_v29  ;;  %v379_v31 = vpop.f32.mrb[0].mxu1 }
 0x1c9   :  { %298 = vst.msk [vmem:[#allocation9 + $0xc] sm:$0xf] %vm294_vm1, %v339_v28  ;;  %v342_v32 = vpack.c.bf16 %v379_v31, %v379_v31  ;;  %v247_v33 = vpop.f32.mrb[1].mxu1 }
 0x1ca   :  { %296 = vst.msk [vmem:[#allocation9 + $0x4] sm:$0xf] %vm294_vm1, %v337_v30  ;;  %v340_v34 = vpack.c.bf16 %v247_v33, %v247_v33  ;;  %v380_v35 = vpop.f32.mrb[2].mxu1 }
 0x1cb   :  { %301 = vst.msk [vmem:[#allocation9 + $0x18] sm:$0xf] %vm294_vm1, %v342_v32  ;;  %v343_v36 = vpack.c.bf16 %v380_v35, %v380_v35  ;;  %v250_v37 = vpop.f32.mrb[3].mxu1 }
 0x1cc   :  { %299 = vst.msk [vmem:[#allocation9 + $0x10] sm:$0xf] %vm294_vm1, %v340_v34  ;;  %v341_v38 = vpack.c.bf16 %v250_v37, %v250_v37 }
 0x1cd   :  { %302 = vst.msk [vmem:[#allocation9 + $0x1c] sm:$0xf] %vm294_vm1, %v343_v36 }
 0x1ce   :  { %300 = vst.msk [vmem:[#allocation9 + $0x14] sm:$0xf] %vm294_vm1, %v341_v38 }
 0x1cf   :  { %486 = shalt.err (!%p483_p0)
}
 0x1d0   :  { %s487_s26 = scalar_lea.hbm %s660_s3, 512 }
 0x1d1   :  { %p488_p1 = scmp.ne.s32.totalorder %s660_s3, %s487_s26  ;;  %p491_p2 = scmp.lt.u32.totalorder %s487_s26, %s660_s3 }
 0x1d3   :  { %p493_p3 = pnand %p491_p2, %p488_p1 }
 0x1d5   :  { %496 = shalt.err (!%p493_p3)
}
 0x1d6   :  { %314 = dma.vmem_to_hbm [thread:$0]  %s309_s22, 512, %s660_s3, [#allocation5], %s505_s1, %s505_s1, %s506_s8  }
 0x1d7   :  { %501 = dma.done.wait [#allocation5], 512  }
 0x1d8   :  { %502 = vsyncadd [#allocation5], 4294966784 }
 0x1d9   :  { %318 = vsyncpa [#allocation4], 1 }
 0x1da   :  { %319 = vsyncpa [#allocation7], 1 }
 0x1db   :  { %320 = vsyncpa [#allocation5], 1 }

</bundles_post_ra>
